<compile_context>
chip_gen: v7x
topology: tpu7x:2x2x1
jax: 0.10.0
libtpu: 0.0.40
codegen_flags: <defaults>
</compile_context>

<pallas_src>
import jax
import jax.numpy as jnp
from jax import lax
from jax.experimental import pallas as pl
from jax.experimental.pallas import tpu as pltpu


def _cdiv(a, b):
    return -(-a // b)


def _round_up(a, m):
    return _cdiv(a, m) * m


def value_function_kernel(x_ref, w1_ref, b1_ref, w2_ref, b2_ref,
                          wf_ref, bf_ref, o_ref):
    # encoder layer 1: Linear + ReLU (f32 accumulation on the MXU)
    h = jnp.dot(x_ref[...], w1_ref[...],
                preferred_element_type=jnp.float32) + b1_ref[...]
    h = jnp.maximum(h, 0.0)

    # encoder layer 2: Linear + ReLU
    h = jnp.dot(h.astype(w2_ref.dtype), w2_ref[...],
                preferred_element_type=jnp.float32) + b2_ref[...]
    h = jnp.maximum(h, 0.0)

    # value head Linear(H, 1): contract (1,H) with (tb,H) over H -> (1, tb)
    # row with batch along lanes (lane-dense output, no N=1 matmul column,
    # no masked (tb,1) stores).
    v = lax.dot_general(wf_ref[...], h.astype(wf_ref.dtype),
                        dimension_numbers=(((1,), (1,)), ((), ())),
                        preferred_element_type=jnp.float32)
    o_ref[0] = (v + bf_ref[0]).astype(o_ref.dtype)


def _choose_batch_tile(B, D, H, itemsize, sub, tile_b):
    """Pick a batch tile that amortizes grid overhead but fits scoped VMEM."""
    tb = min(int(tile_b), _round_up(B, sub))
    tb = max(_round_up(tb, sub), sub)

    # Conservative per-kernel VMEM budget (default scoped limit is 32 MiB on
    # v6e/v7x, 16 MiB on v5e); stay well under it.
    budget = 12 * 1024 * 1024

    def footprint(t):
        x_bytes = 2 * t * D * itemsize            # double-buffered input tile
        out_bytes = 2 * t * 4                     # double-buffered (1, tb) out
        act_bytes = 2 * t * H * 4                 # h intermediates (f32)
        w_bytes = (D * H + H * H + 3 * H) * itemsize  # resident weights
        return x_bytes + out_bytes + act_bytes + w_bytes

    while tb > sub and footprint(tb) > budget:
        tb = max(_round_up(tb // 2, sub), sub)

    # keep >= 2 parallel grid steps for big batches (v7x has 2 TensorCores)
    if B >= 256 and _cdiv(B, tb) < 2:
        tb = max(_round_up(_cdiv(B, 2), sub), sub)
    return tb


def value_function(x, w1, b1, w2, b2, wf, bf, *,
                   tile_b=1024, compute_dtype=jnp.float32):
    """x:(B,D); w1:(D,H); b1:(1,H); w2:(H,H); b2:(1,H); wf:(H,1); bf:(1,1)."""
    B, D = x.shape
    H = w1.shape[1]

    # sublane multiple: 8 for f32, 16 for bf16 (sublane packing)
    itemsize = jnp.dtype(compute_dtype).itemsize
    sub = 8 * (4 // itemsize)
    tb = _choose_batch_tile(B, D, H, itemsize, sub, tile_b)
    num_tiles = _cdiv(B, tb)
    B_pad = num_tiles * tb

    # --- prepare operands -----------------------------------------------------
    x_c = x.astype(compute_dtype)
    if B_pad != B:
        x_c = jnp.pad(x_c, ((0, B_pad - B), (0, 0)))
    w1_c = w1.astype(compute_dtype)
    w2_c = w2.astype(compute_dtype)
    wf_row = wf.reshape(1, H).astype(compute_dtype)   # (1, H) row for the head
    b1_r = b1.reshape(1, H).astype(jnp.float32)
    b2_r = b2.reshape(1, H).astype(jnp.float32)
    bf_s = bf.reshape(1).astype(jnp.float32)          # SMEM scalar

    out = pl.pallas_call(
        value_function_kernel,
        out_shape=jax.ShapeDtypeStruct((num_tiles, 1, tb), jnp.float32),
        grid_spec=pltpu.PrefetchScalarGridSpec(
            num_scalar_prefetch=0,
            grid=(num_tiles,),
            in_specs=[
                pl.BlockSpec((tb, D), lambda i: (i, 0)),            # x tile
                pl.BlockSpec((D, H),  lambda i: (0, 0)),            # W1 (resident)
                pl.BlockSpec((1, H),  lambda i: (0, 0)),            # b1
                pl.BlockSpec((H, H),  lambda i: (0, 0)),            # W2
                pl.BlockSpec((1, H),  lambda i: (0, 0)),            # b2
                pl.BlockSpec((1, H),  lambda i: (0, 0)),            # wf row
                pl.BlockSpec(memory_space=pltpu.MemorySpace.SMEM),  # bf scalar
            ],
            out_specs=pl.BlockSpec((1, 1, tb), lambda i: (i, 0, 0)),
        ),
        compiler_params=pltpu.CompilerParams(
            dimension_semantics=("parallel",)),
    )(x_c, w1_c, b1_r, w2_c, b2_r, wf_row, bf_s)

    # (num_tiles, 1, tb) flattens row-major into batch order; drop padding.
    return out.reshape(-1)[:B].reshape(B, 1)


def reference(x, w1, b1, w2, b2, wf, bf):
    h = jnp.maximum(x @ w1 + b1, 0.0)
    h = jnp.maximum(h @ w2 + b2, 0.0)
    return h @ wf + bf


if __name__ == "__main__":
    key = jax.random.PRNGKey(0)
    obs_dim, hidden = 32, 32

    kx, kp = jax.random.split(key)
    k = jax.random.split(kp, 6)
    w1 = jax.random.uniform(k[0], (obs_dim, hidden), jnp.float32, -0.1, 0.1)
    b1 = jax.random.uniform(k[1], (1, hidden),       jnp.float32, -0.1, 0.1)
    w2 = jax.random.uniform(k[2], (hidden, hidden),  jnp.float32, -0.1, 0.1)
    b2 = jax.random.uniform(k[3], (1, hidden),       jnp.float32, -0.1, 0.1)
    wf = jax.random.uniform(k[4], (hidden, 1),       jnp.float32, -0.1, 0.1)
    bf = jax.random.uniform(k[5], (1, 1),            jnp.float32, -0.1, 0.1)
    params = (w1, b1, w2, b2, wf, bf)

    # 1) small f32 batch (toy shapes consistent with the module)
    x = jax.random.normal(kx, (16, obs_dim), dtype=jnp.float32)
    out = value_function(x, *params)
    jax.block_until_ready(out)
    ref = reference(x, *params)
    assert out.shape == (16, 1)
    assert jnp.allclose(out, ref, atol=1e-4, rtol=1e-4)

    # 2) ragged batch (exercises padding / tail handling)
    x2 = x[:13]
    out2 = value_function(x2, *params)
    jax.block_until_ready(out2)
    assert out2.shape == (13, 1)
    assert jnp.allclose(out2, ref[:13], atol=1e-4, rtol=1e-4)

    # 3) multi-tile grid + bf16 MXU inputs (f32 accumulation / activations)
    x3 = jax.random.normal(jax.random.PRNGKey(1), (256, obs_dim), jnp.float32)
    out3 = value_function(x3, *params, tile_b=64, compute_dtype=jnp.bfloat16)
    jax.block_until_ready(out3)
    ref3 = reference(x3, *params)
    assert out3.shape == (256, 1)
    assert jnp.allclose(out3, ref3, atol=1e-1, rtol=1e-1)

    print("KERNEL_OK")
</pallas_src>

<mosaic_0001>
module attributes {stable_mosaic.version = 11 : i64} {
  func.func @value_function_kernel(%arg0: i32, %arg1: memref<16x32xf32, #tpu.memory_space<vmem>>, %arg2: memref<32x32xf32, #tpu.memory_space<vmem>>, %arg3: memref<1x32xf32, #tpu.memory_space<vmem>>, %arg4: memref<32x32xf32, #tpu.memory_space<vmem>>, %arg5: memref<1x32xf32, #tpu.memory_space<vmem>>, %arg6: memref<1x32xf32, #tpu.memory_space<vmem>>, %arg7: memref<1xf32, #tpu.memory_space<smem>>, %arg8: memref<1x1x16xf32, #tpu.memory_space<vmem>>) attributes {dimension_semantics = [#tpu.dimension_semantics<parallel>], iteration_bounds = array<i64: 1>, scalar_prefetch = 0 : i64, scratch_operands = 0 : i64, tpu.core_type = #tpu.core_type<tc>, window_params = [{transform_indices = @transform_0, window_bounds = array<i64: 16, 32>}, {pipeline_mode = #tpu.pipeline_mode<synchronous>, transform_indices = @transform_1, window_bounds = array<i64: 32, 32>}, {pipeline_mode = #tpu.pipeline_mode<synchronous>, transform_indices = @transform_2, window_bounds = array<i64: 1, 32>}, {pipeline_mode = #tpu.pipeline_mode<synchronous>, transform_indices = @transform_3, window_bounds = array<i64: 32, 32>}, {pipeline_mode = #tpu.pipeline_mode<synchronous>, transform_indices = @transform_4, window_bounds = array<i64: 1, 32>}, {pipeline_mode = #tpu.pipeline_mode<synchronous>, transform_indices = @transform_5, window_bounds = array<i64: 1, 32>}, {transform_indices = @transform_6, window_bounds = array<i64: 1>}, {transform_indices = @transform_7, window_bounds = array<i64: 1, 1, 16>}]} {
    %c0 = arith.constant 0 : index
    %c0_0 = arith.constant 0 : index
    %0 = vector.load %arg1[%c0, %c0_0] : memref<16x32xf32, #tpu.memory_space<vmem>>, vector<16x32xf32>
    %c0_1 = arith.constant 0 : index
    %c0_2 = arith.constant 0 : index
    %1 = vector.load %arg2[%c0_1, %c0_2] : memref<32x32xf32, #tpu.memory_space<vmem>>, vector<32x32xf32>
    %cst = arith.constant dense<0.000000e+00> : vector<16x32xf32>
    %2 = tpu.matmul %0, %1, %cst {dimension_numbers = #tpu.dot_dimension_numbers<[1], [0], [0], [1], [0, 0, 1, 1], [], []>} : vector<16x32xf32>, vector<32x32xf32>, vector<16x32xf32> -> vector<16x32xf32>
    %c0_3 = arith.constant 0 : index
    %c0_4 = arith.constant 0 : index
    %3 = vector.load %arg3[%c0_3, %c0_4] : memref<1x32xf32, #tpu.memory_space<vmem>>, vector<1x32xf32>
    %4 = vector.broadcast %3 : vector<1x32xf32> to vector<16x32xf32>
    %5 = arith.addf %2, %4 : vector<16x32xf32>
    %cst_5 = arith.constant 0.000000e+00 : f32
    %6 = vector.broadcast %cst_5 : f32 to vector<16x32xf32>
    %7 = arith.maximumf %5, %6 : vector<16x32xf32>
    %c0_6 = arith.constant 0 : index
    %c0_7 = arith.constant 0 : index
    %8 = vector.load %arg4[%c0_6, %c0_7] : memref<32x32xf32, #tpu.memory_space<vmem>>, vector<32x32xf32>
    %cst_8 = arith.constant dense<0.000000e+00> : vector<16x32xf32>
    %9 = tpu.matmul %7, %8, %cst_8 {dimension_numbers = #tpu.dot_dimension_numbers<[1], [0], [0], [1], [0, 0, 1, 1], [], []>} : vector<16x32xf32>, vector<32x32xf32>, vector<16x32xf32> -> vector<16x32xf32>
    %c0_9 = arith.constant 0 : index
    %c0_10 = arith.constant 0 : index
    %10 = vector.load %arg5[%c0_9, %c0_10] : memref<1x32xf32, #tpu.memory_space<vmem>>, vector<1x32xf32>
    %11 = vector.broadcast %10 : vector<1x32xf32> to vector<16x32xf32>
    %12 = arith.addf %9, %11 : vector<16x32xf32>
    %cst_11 = arith.constant 0.000000e+00 : f32
    %13 = vector.broadcast %cst_11 : f32 to vector<16x32xf32>
    %14 = arith.maximumf %12, %13 : vector<16x32xf32>
    %c0_12 = arith.constant 0 : index
    %c0_13 = arith.constant 0 : index
    %15 = vector.load %arg6[%c0_12, %c0_13] : memref<1x32xf32, #tpu.memory_space<vmem>>, vector<1x32xf32>
    %cst_14 = arith.constant dense<0.000000e+00> : vector<1x16xf32>
    %16 = tpu.matmul %15, %14, %cst_14 {dimension_numbers = #tpu.dot_dimension_numbers<[1], [1], [0], [0], [0, 0, 1, 0], [], []>} : vector<1x32xf32>, vector<16x32xf32>, vector<1x16xf32> -> vector<1x16xf32>
    %c0_15 = arith.constant 0 : index
    %17 = memref.load %arg7[%c0_15] : memref<1xf32, #tpu.memory_space<smem>>
    %18 = vector.broadcast %17 : f32 to vector<1x16xf32>
    %19 = arith.addf %16, %18 : vector<1x16xf32>
    %c0_16 = arith.constant 0 : index
    %c0_17 = arith.constant 0 : index
    %c0_18 = arith.constant 0 : index
    %20 = vector.load %arg8[%c0_16, %c0_17, %c0_18] : memref<1x1x16xf32, #tpu.memory_space<vmem>>, vector<1x1x16xf32>
    %21 = vector.shape_cast %20 : vector<1x1x16xf32> to vector<1x16xf32>
    %22 = vector.shape_cast %19 : vector<1x16xf32> to vector<1x1x16xf32>
    tpu.vector_store %arg8[%c0_16, %c0_17, %c0_18], %22 {strides = array<i32>} : memref<1x1x16xf32, #tpu.memory_space<vmem>>, vector<1x1x16xf32>,
    return
  }
  func.func @transform_0(%arg0: i32) -> (i32, i32) {
    %c0_i32 = arith.constant 0 : i32
    %c0_i32_0 = arith.constant 0 : i32
    return %arg0, %c0_i32 : i32, i32
  }
  func.func @transform_1(%arg0: i32) -> (i32, i32) {
    %c0_i32 = arith.constant 0 : i32
    %c0_i32_0 = arith.constant 0 : i32
    %c0_i32_1 = arith.constant 0 : i32
    return %c0_i32, %c0_i32_0 : i32, i32
  }
  func.func @transform_2(%arg0: i32) -> (i32, i32) {
    %c0_i32 = arith.constant 0 : i32
    %c0_i32_0 = arith.constant 0 : i32
    %c0_i32_1 = arith.constant 0 : i32
    return %c0_i32, %c0_i32_0 : i32, i32
  }
  func.func @transform_3(%arg0: i32) -> (i32, i32) {
    %c0_i32 = arith.constant 0 : i32
    %c0_i32_0 = arith.constant 0 : i32
    %c0_i32_1 = arith.constant 0 : i32
    return %c0_i32, %c0_i32_0 : i32, i32
  }
  func.func @transform_4(%arg0: i32) -> (i32, i32) {
    %c0_i32 = arith.constant 0 : i32
    %c0_i32_0 = arith.constant 0 : i32
    %c0_i32_1 = arith.constant 0 : i32
    return %c0_i32, %c0_i32_0 : i32, i32
  }
  func.func @transform_5(%arg0: i32) -> (i32, i32) {
    %c0_i32 = arith.constant 0 : i32
    %c0_i32_0 = arith.constant 0 : i32
    %c0_i32_1 = arith.constant 0 : i32
    return %c0_i32, %c0_i32_0 : i32, i32
  }
  func.func @transform_6(%arg0: i32) -> i32 {
    %c0_i32 = arith.constant 0 : i32
    %c0_i32_0 = arith.constant 0 : i32
    return %c0_i32 : i32
  }
  func.func @transform_7(%arg0: i32) -> (i32, i32, i32) {
    %c0_i32 = arith.constant 0 : i32
    %c0_i32_0 = arith.constant 0 : i32
    %c0_i32_1 = arith.constant 0 : i32
    return %arg0, %c0_i32, %c0_i32_0 : i32, i32, i32
  }
}

</mosaic_0001>

<bundles_post_ra>
// kernel: tpu_custom_call.1
= control target key start
LH: loop header
LB: loop body
LE: loop exit
PB: predicated region body
PF: predicated region fallthrough
CT: control target
= control target key end

     0   :  { %13 = vsyncpa [#allocation4], 0  ;;  %s668_s0 = inlined_call_operand.hbm [shape: f32[16,32], index: 0, kind: input, shape index: {}]   ;;  %s669_s1 = inlined_call_operand.hbm [shape: f32[32,32], index: 1, kind: input, shape index: {}]   ;;  %s670_s2 = inlined_call_operand.vmem [shape: f32[1,32], index: 2, kind: input, shape index: {}]   ;;  %s671_s3 = inlined_call_operand.hbm [shape: f32[32,32], index: 3, kind: input, shape index: {}]   ;;  %s672_s4 = inlined_call_operand.vmem [shape: f32[1,32], index: 4, kind: input, shape index: {}]   ;;  %s673_s5 = inlined_call_operand.vmem [shape: f32[1,32], index: 5, kind: input, shape index: {}]   ;;  %s674_s6 = inlined_call_operand.<no memory space> [shape: f32[1], index: 6, kind: input, shape index: {}]   ;;  %s675_s7 = inlined_call_operand.hbm [shape: f32[1,1,16], index: 7, kind: output, shape index: {}]  }
   0x1   :  { %14 = vsyncpa [#allocation7], 0 }
   0x2   :  { %15 = vsyncpa [#allocation5], 0  ;;  %s536_s24 = smov [#allocation6]   ;;  %s537_s26 = smov [#allocation3]  }
   0x3   :  { %s33_s25 = sshll.u32 %s536_s24, 4  ;;  %s21_s27 = sshll.u32 %s537_s26, 4  ;;  %s34_s25 = int_to_ptr.vmem [resolvable:$true] %s33_s25  ;;  %s585_s27 = int_to_ptr.vmem [resolvable:$true] %s21_s27 }
   0x4   :  { %s442_s30 = scalar_lea.hbm %s669_s1, 512 }
   0x5   :  { %p443_p0 = scmp.ne.s32.totalorder %s669_s1, %s442_s30  ;;  %p446_p1 = scmp.lt.u32.totalorder %s442_s30, %s669_s1 }
   0x7   :  { %p448_p2 = pnand %p446_p1, %p443_p0 }
   0x9   :  { %451 = shalt.err (!%p448_p2)
}
   0xa   :  { %s452_s12 = scalar_lea.vmem %s34_s25, 512  ;;  %p457_p4 = scmp.lt.s32.totalorder %s34_s25, %s34_s25 }
   0xb   :  { %p453_p3 = scmp.ne.s32.totalorder %s34_s25, %s452_s12  ;;  %p458_p5 = scmp.lt.s32.totalorder %s452_s12, %s452_s12 }
   0xd   :  { %p459_p6 = por %p458_p5, %p457_p4 }
   0xf   :  { %p460_p7 = pnand %p459_p6, %p453_p3 }
  0x11   :  { %463 = shalt.err (!%p460_p7)
}
  0x12   :  { %s538_s13 = smov 128   ;;  %s539_s14 = smov 8  }
  0x13   :  { %39 = dma.hbm_to_vmem [thread:$0]  %s669_s1, 512, %s34_s25, [#allocation7], %s538_s13, %s538_s13, %s539_s14  }
  0x14   :  { %s464_s19 = scalar_lea.hbm %s668_s0, 256 }
  0x15   :  { %p465_p8 = scmp.ne.s32.totalorder %s668_s0, %s464_s19  ;;  %p468_p9 = scmp.lt.u32.totalorder %s464_s19, %s668_s0 }
  0x17   :  { %p470_p10 = pnand %p468_p9, %p465_p8 }
  0x19   :  { %473 = shalt.err (!%p470_p10)
}
  0x1a   :  { %s474_s24 = scalar_lea.vmem %s585_s27, 256  ;;  %p479_p12 = scmp.lt.s32.totalorder %s585_s27, %s585_s27 }
  0x1b   :  { %p475_p11 = scmp.ne.s32.totalorder %s585_s27, %s474_s24  ;;  %p480_p13 = scmp.lt.s32.totalorder %s474_s24, %s474_s24 }
  0x1d   :  { %p481_p0 = por %p480_p13, %p479_p12 }
  0x1f   :  { %p482_p1 = pnand %p481_p0, %p475_p11 }
  0x21   :  { %485 = shalt.err (!%p482_p1)
}
  0x22   :  { %27 = dma.hbm_to_vmem [thread:$0]  %s668_s0, 256, %s585_s27, [#allocation4], %s538_s13, %s538_s13, %s539_s14  }
  0x23   :  { %s540_s26 = smov [#allocation8]   ;;  %s486_s8 = scalar_lea.hbm %s671_s3, 512 }
  0x24   :  { %s47_s28 = sshll.u32 %s540_s26, 4  ;;  %p487_p2 = scmp.ne.s32.totalorder %s671_s3, %s486_s8  ;;  %s48_s28 = int_to_ptr.vmem [resolvable:$true] %s47_s28 }
  0x25   :  { %p490_p3 = scmp.lt.u32.totalorder %s486_s8, %s671_s3 }
  0x27   :  { %p492_p4 = pnand %p490_p3, %p487_p2 }
  0x29   :  { %495 = shalt.err (!%p492_p4)
}
  0x2a   :  { %s496_s15 = scalar_lea.vmem %s48_s28, 512  ;;  %p501_p6 = scmp.lt.s32.totalorder %s48_s28, %s48_s28 }
  0x2b   :  { %p497_p5 = scmp.ne.s32.totalorder %s48_s28, %s496_s15  ;;  %p502_p7 = scmp.lt.s32.totalorder %s496_s15, %s496_s15 }
  0x2d   :  { %p503_p8 = por %p502_p7, %p501_p6 }
  0x2f   :  { %p504_p9 = pnand %p503_p8, %p497_p5 }
  0x31   :  { %507 = shalt.err (!%p504_p9)
}
  0x32   :  { %53 = dma.hbm_to_vmem [thread:$0]  %s671_s3, 512, %s48_s28, [#allocation7], %s538_s13, %s538_s13, %s539_s14  }
  0x33   :  { %530 = dma.done.wait [#allocation4], 256  }
  0x34   :  { %531 = vsyncadd [#allocation4], 4294967040 }
  0x35   :  { %532 = dma.done.wait [#allocation7], 1024  }
  0x36   :  { %533 = vsyncadd [#allocation7], 4294966272  ;;  %vm82_vm0 = vcmask 261120   ;;  %v71_v0 = vld [vmem:[#allocation6] sm:$0xff]  ;;  %v72_v1 = vld [vmem:[#allocation6 + $0x8] sm:$0xff]  ;;  %v541_v21 = vmov 0.0|0.0   ;;  %v262_v32 = vstv %s674_s6 }
  0x37   :  { %v73_v2 = vld [vmem:[#allocation6 + $0x10] sm:$0xff]  ;;  %v413_v3 = vpack.c.bf16 %v72_v1, %v71_v0  ;;  %v74_v4 = vld [vmem:[#allocation6 + $0x18] sm:$0xff]  ;;  %v166_v7 = vld [vmem:[#allocation8] sm:$0xff]  ;;  %vm542_vm1 = vmmov 0   ;;  %v543_v22 = vmov 0.0   ;;  %vm342_vm3 = vcmask 122880  }
  0x38   :  { %v69_v5 = vld [vmem:[#allocation3] sm:$0xff]  ;;  %v417_v6 = vpack.c.bf16 %v74_v4, %v73_v2  ;;  %v167_v8 = vld [vmem:[#allocation8 + $0x8] sm:$0xff]  ;;  %v70_v10 = vld [vmem:[#allocation3 + $0x8] sm:$0xff] }
  0x39   :  { %392 = vmatprep.mubr.msk.f32.mxu0 %vm82_vm0, %v69_v5  ;;  %414 = vmatprep.subr.bf16.mxu0 %v413_v3  ;;  %v421_v9 = vpack.c.bf16 %v167_v8, %v166_v7  ;;  %v168_v11 = vld [vmem:[#allocation8 + $0x10] sm:$0xff]  ;;  %v169_v12 = vld [vmem:[#allocation8 + $0x18] sm:$0xff]  ;;  %vm431_vm2 = vmpackc.low %vm82_vm0, %vm82_vm0 }
  0x3a   :  { %416 = vmatpush3.bf16.msra.mxu0 %v413_v3  ;;  %v425_v13 = vpack.c.bf16 %v169_v12, %v168_v11  ;;  %v360_v14 = vld [vmem:[%s670_s2] ss:$0 sm:$0xff] }
  0x3b   :  { %418 = vmatprep.subr.bf16.mxu0 %v417_v6  ;;  %422 = vmatprep.subr.bf16.mxu1 %v421_v9  ;;  %v363_v23 = vld [vmem:[%s672_s4] ss:$0 sm:$0xff]  ;;  %s544_s4 = smov [#allocation9]  }
  0x3c   :  { %424 = vmatpush3.bf16.msra.mxu1 %v421_v9  ;;  %v260_v31 = vld [vmem:[%s673_s5] sm:$0x1]  ;;  %s350_s20 = sshll.u32 %s544_s4, 4  ;;  %s351_s20 = int_to_ptr.vmem [resolvable:$true] %s350_s20 }
  0x3d   :  { %426 = vmatprep.subr.bf16.mxu1 %v425_v13  ;;  %s508_s21 = scalar_lea.vmem %s351_s20, 16  ;;  %s512_s22 = scalar_lea.vmem %s351_s20, 32 }
  0x3e   :  { %420 = vmatpush3.bf16.msra.mxu0 %v417_v6  ;;  %p509_p10 = scmp.ne.s32.totalorder %s351_s20, %s508_s21  ;;  %p513_p11 = scmp.lt.s32.totalorder %s351_s20, %s351_s20 }
  0x3f   :  { %429 = vmatprep.subr.bf16.mxu0 %v541_v21  ;;  %p514_p12 = scmp.lt.s32.totalorder %s512_s22, %s508_s21 }
  0x40   :  { %428 = vmatpush3.bf16.msra.mxu1 %v425_v13 }
  0x41   :  { %393 = vmatmul.mubr.msk.f32.vlgmr.msra.gmra.mrb[0].mxu0 %vm82_vm0, %v70_v10  ;;  %p515_p13 = por %p514_p12, %p513_p11 }
  0x42   :  { %410 = vmatprep.mubr.msk.f32.mxu0 %vm542_vm1, %v543_v22 }
  0x43   :  { %p516_p0 = pnand %p515_p13, %p509_p10 }
 0x114   :  { %v394_v15 = vpop.f32.mrb[0].mxu0 }
 0x115   :  { %v161_v16 = vadd.f32 %v394_v15, %v360_v14  ;;  %v155_v17 = vpop.f32.mrb[1].mxu0 }
 0x116   :  { %v156_v18 = vadd.f32 %v360_v14, %v155_v17 }
 0x117   :  { %v165_v20 = vmax.f32 %v161_v16, 0.0 }
 0x118   :  { %v164_v19 = vmax.f32 %v156_v18, 0.0 }
 0x11a   :  { %403 = vmatprep.mubr.msk.f32.mxu1 %vm82_vm0, %v164_v19 }
 0x11b   :  { %404 = vmatmul.mubr.msk.f32.vlgmr.msra.gmra.mrb[0].mxu1 %vm82_vm0, %v165_v20 }
 0x1ee   :  { %v405_v24 = vpop.f32.mrb[0].mxu1 }
 0x1ef   :  { %v255_v25 = vadd.f32 %v405_v24, %v363_v23  ;;  %v249_v26 = vpop.f32.mrb[1].mxu1 }
 0x1f0   :  { %v250_v27 = vadd.f32 %v363_v23, %v249_v26 }
 0x1f1   :  { %v259_v28 = vmax.f32 %v255_v25, 0.0 }
 0x1f2   :  { %v258_v29 = vmax.f32 %v250_v27, 0.0 }
 0x1f4   :  { %v430_v30 = vpack.c.bf16 %v259_v28, %v258_v29 }
 0x1f6   :  { %432 = vmatpush3.bf16.xpose.msk.msra.mxu0 %vm431_vm2, %v430_v30 }
 0x1fd   :  { %411 = vmatmul.mubr.msk.f32.vlgmr.msra.gmra.mrb[2].mxu0 %vm82_vm0, %v260_v31 }
 0x2d0   :  { %v338_v33 = vpop.f32.mrb[2].mxu0 }
 0x2d1   :  { %v339_v34 = vadd.f32 %v338_v33, %v262_v32  ;;  %v412_v35 = vpop.f32.mrb[3].mxu0 }
 0x2d3   :  { %343 = vst.msk [vmem:[#allocation9] sm:$0x1] %vm342_vm3, %v339_v34 }
 0x2d4   :  { %519 = shalt.err (!%p516_p0)
}
 0x2d5   :  { %s520_s6 = scalar_lea.hbm %s675_s7, 16 }
 0x2d6   :  { %p521_p1 = scmp.ne.s32.totalorder %s675_s7, %s520_s6  ;;  %p524_p2 = scmp.lt.u32.totalorder %s520_s6, %s675_s7 }
 0x2d8   :  { %p526_p3 = pnand %p524_p2, %p521_p1 }
 0x2da   :  { %529 = shalt.err (!%p526_p3)
}
 0x2db   :  { %353 = dma.vmem_to_hbm [thread:$0]  %s351_s20, 16, %s675_s7, [#allocation5]  }
 0x2dc   :  { %534 = dma.done.wait [#allocation5], 16  }
 0x2dd   :  { %535 = vsyncadd [#allocation5], 4294967280 }
 0x2de   :  { %357 = vsyncpa [#allocation4], 1 }
 0x2df   :  { %358 = vsyncpa [#allocation7], 1 }
 0x2e0   :  { %359 = vsyncpa [#allocation5], 1 }

</bundles_post_ra>
